<compile_context>
chip_gen: v7x
topology: tpu7x:2x2x1
jax: 0.10.0
libtpu: 0.0.40
codegen_flags: <defaults>
</compile_context>

<pallas_src>
import jax
import jax.numpy as jnp
from jax import lax
from jax.experimental import pallas as pl
from jax.experimental.pallas import tpu as pltpu


def _round_up(v, m):
    return ((v + m - 1) // m) * m


def _preproc_kernel(x_ref, w_ref, b_ref, pos_ref, o_ref):
    # x_ref:   (1, C_in, TN)   slab of downsampled pixels, channel-major (orig dtype)
    # w_ref:   (C_in, C_out)   1x1-conv weight, transposed for right-multiply (f32)
    # b_ref:   (1, C_out)      conv bias (f32)
    # pos_ref: (TN, P)         positional-embedding tile (shared across batch)
    # o_ref:   (1, TN, C_out + P)
    x = x_ref[0].astype(jnp.float32)                          # (C_in, TN); cast folded in-kernel
    # Contract the leading C_in axis of both operands (transposed-LHS matmul): output is
    # (TN, C_out) with f32 accumulation; the MXU handles the TN lanes->sublanes flip.
    y = lax.dot_general(x, w_ref[...],
                        dimension_numbers=(((0,), (0,)), ((), ())),
                        preferred_element_type=jnp.float32)   # (TN, C_out)
    y = y + b_ref[...]                                        # broadcast (1, C_out)
    # Single full-width store: concatenate conv output and pos in vregs, store once.
    o_ref[0] = jnp.concatenate(
        [y.astype(o_ref.dtype), pos_ref[...].astype(o_ref.dtype)], axis=-1)


def image_preprocessor_conv1x1(x_nchw, weight, bias, pos_emb,
                               spatial_downsample=1,
                               out_dtype=jnp.float32,   # pass jnp.bfloat16 when downstream allows
                               tn_max=4096):
    """x_nchw: (B, 3, H, W) any float dtype; weight: (C_out, 3); bias: (C_out,); pos_emb: (N, P)."""
    B, C_in, H, W = x_nchw.shape
    C_out = weight.shape[0]
    P = pos_emb.shape[-1]

    # --- glue (pure JAX, original dtype): strided 1x1-conv pixel gather, kept channel-major ---
    # TODO(synk): for spatial_downsample > 1 this slice is an extra XLA pass over the full-res
    # image; it could be folded into the kernel with strided pl.ds / sublane selection.
    x_ds = x_nchw[:, :, ::spatial_downsample, ::spatial_downsample]   # (B, C_in, H', W')
    Hp, Wp = x_ds.shape[2], x_ds.shape[3]
    N = Hp * Wp
    assert N == pos_emb.shape[0], "position encoding index_dims mismatch"
    x_flat = x_ds.reshape(B, C_in, N)        # contiguous row-major reshape: free for ds == 1

    w_t = weight.T.astype(jnp.float32)            # (C_in, C_out), tiny
    b2d = bias.reshape(1, C_out).astype(jnp.float32)

    D = C_out + P        # keep a multiple of 128 for a lane-dense dominant store

    in_b = jnp.dtype(x_nchw.dtype).itemsize
    pos_b = jnp.dtype(pos_emb.dtype).itemsize
    out_b = jnp.dtype(out_dtype).itemsize

    # --- N-tile size: largest multiple of 128 whose double-buffered x/pos/out blocks fit a
    # ~20 MiB budget (safe on v7x's 64 MiB VMEM; v5e/v6e have more headroom), capped at tn_max.
    # Per-row VMEM bytes: x block is (C_in->8 sublanes, tn lanes); pos and out lane-pad to 128.
    per_row = 8 * in_b + _round_up(P, 128) * pos_b + _round_up(D, 128) * out_b
    budget = 20 * 1024 * 1024
    tn_cap = max(128, min((budget // (2 * per_row)) // 128 * 128, tn_max))
    tn = N if N <= tn_cap else tn_cap

    # v7x has 2 TensorCores: ensure a few grid steps for sharding / pipeline overlap, but never
    # shrink below 512 rows (per-step DMA must stay well above the ~0.35 us step overhead).
    while B * pl.cdiv(N, tn) < 4 and tn > 512:
        cand = max(512, ((tn // 2) // 128) * 128)
        if cand >= tn:
            break
        tn = cand

    n_tiles = pl.cdiv(N, tn)

    grid_spec = pltpu.PrefetchScalarGridSpec(
        num_scalar_prefetch=0,
        # Batch innermost: the pos tile's block index is constant across consecutive steps,
        # so it is DMA'd once per N-tile, not once per (N-tile, batch) step.
        grid=(n_tiles, B),
        in_specs=[
            pl.BlockSpec((1, C_in, tn), lambda n, b: (b, 0, n)),   # x slab: 3 contiguous rows
            pl.BlockSpec((C_in, C_out), lambda n, b: (0, 0)),      # weight (fetched once)
            pl.BlockSpec((1, C_out),    lambda n, b: (0, 0)),      # bias   (fetched once)
            pl.BlockSpec((tn, P),       lambda n, b: (n, 0)),      # pos tile (once per N-tile)
        ],
        out_specs=pl.BlockSpec((1, tn, D), lambda n, b: (b, n, 0)),
    )

    # Advisory cost so XLA schedules/overlaps surrounding ops around a bandwidth-bound call.
    cost = pl.CostEstimate(
        flops=2 * B * N * C_in * C_out,
        transcendentals=0,
        bytes_accessed=int(B * N * C_in * in_b + N * P * pos_b
                           + B * N * D * out_b + C_in * C_out * 4 + C_out * 4),
    )

    fn = pl.pallas_call(
        _preproc_kernel,
        out_shape=jax.ShapeDtypeStruct((B, N, D), out_dtype),
        grid_spec=grid_spec,
        compiler_params=pltpu.CompilerParams(
            dimension_semantics=("parallel", "parallel"),
            vmem_limit_bytes=32 * 1024 * 1024),
        cost_estimate=cost,
    )
    return fn(x_flat, w_t, b2d, pos_emb)


def _reference(x, weight, bias, pos_emb, spatial_downsample):
    """Pure-JAX reference matching the PyTorch module (f32 math)."""
    B, C_in, H, W = x.shape
    x_ds = x[:, :, ::spatial_downsample, ::spatial_downsample].astype(jnp.float32)
    N = x_ds.shape[2] * x_ds.shape[3]
    x_flat = jnp.transpose(x_ds.reshape(B, C_in, N), (0, 2, 1))
    y = jnp.einsum("bnc,oc->bno", x_flat, weight.astype(jnp.float32))
    y = y + bias.astype(jnp.float32)[None, None, :]
    pos = jnp.broadcast_to(pos_emb.astype(jnp.float32)[None], (B, N, pos_emb.shape[-1]))
    return jnp.concatenate([y, pos], axis=-1)


if __name__ == "__main__":
    key = jax.random.PRNGKey(0)
    k_x, k_w, k_b, k_pos = jax.random.split(key, 4)

    B, C_in, H, W = 2, 3, 16, 16

    # --- Test 1: f32 in/out, spatial_downsample=2, D = C_out+P = 128 (lane-dense store) ---
    ds = 2
    C_out, P = 64, 64
    N = (H // ds) * (W // ds)                       # 64

    x = jax.random.normal(k_x, (B, C_in, H, W), dtype=jnp.float32)
    w = jax.random.normal(k_w, (C_out, C_in), dtype=jnp.float32) * 0.1
    b = jax.random.normal(k_b, (C_out,), dtype=jnp.float32) * 0.1
    pos = jax.random.normal(k_pos, (N, P), dtype=jnp.float32) * 0.02

    out = jax.block_until_ready(
        image_preprocessor_conv1x1(x, w, b, pos, spatial_downsample=ds))
    ref = _reference(x, w, b, pos, ds)
    assert out.shape == (B, N, C_out + P)
    assert jnp.allclose(out, ref, atol=1e-4, rtol=1e-4)

    # --- Test 2: bf16 in & out, downsample=1, D = 256 (lane-dense), multiple N tiles ---
    # (bf16 output halves the dominant HBM write; compute still accumulates in f32.)
    ds2 = 1
    C_out2, P2 = 128, 128
    N2 = H * W                                      # 256 -> two N-tiles of 128

    x2 = jax.random.normal(k_x, (B, C_in, H, W), dtype=jnp.float32).astype(jnp.bfloat16)
    w2 = jax.random.normal(k_w, (C_out2, C_in), dtype=jnp.float32) * 0.1
    b2 = jax.random.normal(k_b, (C_out2,), dtype=jnp.float32) * 0.1
    pos2 = (jax.random.normal(k_pos, (N2, P2), dtype=jnp.float32) * 0.02).astype(jnp.bfloat16)

    out2 = jax.block_until_ready(
        image_preprocessor_conv1x1(x2, w2, b2, pos2, spatial_downsample=ds2,
                                   out_dtype=jnp.bfloat16, tn_max=128))
    ref2 = _reference(x2, w2, b2, pos2, ds2)
    assert out2.shape == (B, N2, C_out2 + P2)
    assert out2.dtype == jnp.bfloat16
    assert jnp.allclose(out2.astype(jnp.float32), ref2, atol=2e-2, rtol=2e-2)

    # --- Test 3: ragged final N tile (N=320, tn=128 -> tiles 128/128/64), f32, D=128 ---
    W3 = 20
    ds3 = 1
    C_out3, P3 = 64, 64
    N3 = H * W3                                     # 320

    x3 = jax.random.normal(k_x, (B, C_in, H, W3), dtype=jnp.float32)
    w3 = jax.random.normal(k_w, (C_out3, C_in), dtype=jnp.float32) * 0.1
    b3 = jax.random.normal(k_b, (C_out3,), dtype=jnp.float32) * 0.1
    pos3 = jax.random.normal(k_pos, (N3, P3), dtype=jnp.float32) * 0.02

    out3 = jax.block_until_ready(
        image_preprocessor_conv1x1(x3, w3, b3, pos3, spatial_downsample=ds3, tn_max=128))
    ref3 = _reference(x3, w3, b3, pos3, ds3)
    assert out3.shape == (B, N3, C_out3 + P3)
    assert jnp.allclose(out3, ref3, atol=1e-4, rtol=1e-4)

    # TODO(synk): prep_type='conv' / 'patches' raise NotImplementedError in the reference
    # module; 'pixels' and concat_or_add_pos='add' are trivial variants not exercised here.
    print("KERNEL_OK")
</pallas_src>

<mosaic_0001>
module attributes {stable_mosaic.version = 11 : i64} {
  func.func @_preproc_kernel(%arg0: i32, %arg1: i32, %arg2: memref<1x3x64xf32, #tpu.memory_space<vmem>>, %arg3: memref<3x64xf32, #tpu.memory_space<vmem>>, %arg4: memref<1x64xf32, #tpu.memory_space<vmem>>, %arg5: memref<64x64xf32, #tpu.memory_space<vmem>>, %arg6: memref<1x64x128xf32, #tpu.memory_space<vmem>>) attributes {dimension_semantics = [#tpu.dimension_semantics<parallel>, #tpu.dimension_semantics<parallel>], iteration_bounds = array<i64: 1, 2>, scalar_prefetch = 0 : i64, scratch_operands = 0 : i64, tpu.core_type = #tpu.core_type<tc>, window_params = [{transform_indices = @transform_0, window_bounds = array<i64: 1, 3, 64>}, {pipeline_mode = #tpu.pipeline_mode<synchronous>, transform_indices = @transform_1, window_bounds = array<i64: 3, 64>}, {pipeline_mode = #tpu.pipeline_mode<synchronous>, transform_indices = @transform_2, window_bounds = array<i64: 1, 64>}, {transform_indices = @transform_3, window_bounds = array<i64: 64, 64>}, {transform_indices = @transform_4, window_bounds = array<i64: 1, 64, 128>}]} {
    %c0 = arith.constant 0 : index
    %c0_0 = arith.constant 0 : index
    %c0_1 = arith.constant 0 : index
    %0 = vector.load %arg2[%c0, %c0_0, %c0_1] : memref<1x3x64xf32, #tpu.memory_space<vmem>>, vector<1x3x64xf32>
    %1 = vector.shape_cast %0 : vector<1x3x64xf32> to vector<3x64xf32>
    %c0_2 = arith.constant 0 : index
    %c0_3 = arith.constant 0 : index
    %2 = vector.load %arg3[%c0_2, %c0_3] : memref<3x64xf32, #tpu.memory_space<vmem>>, vector<3x64xf32>
    %cst = arith.constant dense<0.000000e+00> : vector<64x64xf32>
    %3 = tpu.matmul %1, %2, %cst {dimension_numbers = #tpu.dot_dimension_numbers<[0], [0], [1], [1], [0, 1, 1, 1], [], []>} : vector<3x64xf32>, vector<3x64xf32>, vector<64x64xf32> -> vector<64x64xf32>
    %c0_4 = arith.constant 0 : index
    %c0_5 = arith.constant 0 : index
    %4 = vector.load %arg4[%c0_4, %c0_5] : memref<1x64xf32, #tpu.memory_space<vmem>>, vector<1x64xf32>
    %5 = vector.broadcast %4 : vector<1x64xf32> to vector<64x64xf32>
    %6 = arith.addf %3, %5 : vector<64x64xf32>
    %c0_6 = arith.constant 0 : index
    %c0_7 = arith.constant 0 : index
    %7 = vector.load %arg5[%c0_6, %c0_7] : memref<64x64xf32, #tpu.memory_space<vmem>>, vector<64x64xf32>
    %8 = tpu.concatenate %6, %7 in 1 : vector<64x64xf32>, vector<64x64xf32> -> vector<64x128xf32>
    %c0_8 = arith.constant 0 : index
    %c0_9 = arith.constant 0 : index
    %c0_10 = arith.constant 0 : index
    %9 = vector.load %arg6[%c0_8, %c0_9, %c0_10] : memref<1x64x128xf32, #tpu.memory_space<vmem>>, vector<1x64x128xf32>
    %10 = vector.shape_cast %9 : vector<1x64x128xf32> to vector<64x128xf32>
    %11 = vector.shape_cast %8 : vector<64x128xf32> to vector<1x64x128xf32>
    tpu.vector_store %arg6[%c0_8, %c0_9, %c0_10], %11 {strides = array<i32>} : memref<1x64x128xf32, #tpu.memory_space<vmem>>, vector<1x64x128xf32>,
    return
  }
  func.func @transform_0(%arg0: i32, %arg1: i32) -> (i32, i32, i32) {
    %c0_i32 = arith.constant 0 : i32
    %c0_i32_0 = arith.constant 0 : i32
    return %arg1, %c0_i32, %arg0 : i32, i32, i32
  }
  func.func @transform_1(%arg0: i32, %arg1: i32) -> (i32, i32) {
    %c0_i32 = arith.constant 0 : i32
    %c0_i32_0 = arith.constant 0 : i32
    %c0_i32_1 = arith.constant 0 : i32
    return %c0_i32, %c0_i32_0 : i32, i32
  }
  func.func @transform_2(%arg0: i32, %arg1: i32) -> (i32, i32) {
    %c0_i32 = arith.constant 0 : i32
    %c0_i32_0 = arith.constant 0 : i32
    %c0_i32_1 = arith.constant 0 : i32
    return %c0_i32, %c0_i32_0 : i32, i32
  }
  func.func @transform_3(%arg0: i32, %arg1: i32) -> (i32, i32) {
    %c0_i32 = arith.constant 0 : i32
    %c0_i32_0 = arith.constant 0 : i32
    return %arg0, %c0_i32 : i32, i32
  }
  func.func @transform_4(%arg0: i32, %arg1: i32) -> (i32, i32, i32) {
    %c0_i32 = arith.constant 0 : i32
    %c0_i32_0 = arith.constant 0 : i32
    return %arg1, %arg0, %c0_i32 : i32, i32, i32
  }
}

</mosaic_0001>

<bundles_post_ra>
// kernel: tpu_custom_call.1
= control target key start
LH: loop header
LB: loop body
LE: loop exit
PB: predicated region body
PF: predicated region fallthrough
CT: control target
= control target key end

     0   :  { %9 = vsyncpa [#allocation3], 0  ;;  %s1037_s0 = inlined_call_operand.vmem [shape: f32[2,3,64], index: 0, kind: input, shape index: {}]   ;;  %s1038_s1 = inlined_call_operand.vmem [shape: f32[3,64], index: 1, kind: input, shape index: {}]   ;;  %s1039_s2 = inlined_call_operand.vmem [shape: f32[1,64], index: 2, kind: input, shape index: {}]   ;;  %s1040_s3 = inlined_call_operand.hbm [shape: f32[64,64], index: 3, kind: input, shape index: {}]   ;;  %s1041_s4 = inlined_call_operand.hbm [shape: f32[2,64,128], index: 4, kind: output, shape index: {}]  }
   0x1   :  { %10 = vsyncpa [#allocation4], 0 }
   0x2   :  { %12 = vsyncpa [#allocation4 + $0x1], 0  ;;  %s847_s15 = smov 0   ;;  %s849_s16 = smov 0  }
   0x3   :  { %s851_s17 = smov 0   ;;  %s853_s18 = smov 0  }
   0x4   :  { %s855_s19 = smov 0   ;;  %s857_s20 = smov 0  }
   0x5 LB: > { %s581_s21 = sadd.s32 4294967295, %s813_s20   ;;  %s582_s22 = sadd.s32 4294967294, %s813_s20   ;;  %s813_s20 = sphi %s857_s20, %s18_s20   ;;  %s809_s19 = sphi %s855_s19, %s1059_s19   ;;  %s805_s18 = sphi %s853_s18, %s1058_s18   ;;  %s801_s17 = sphi %s851_s17, %s1057_s17   ;;  %s797_s16 = sphi %s849_s16, %s1056_s16   ;;  %s793_s15 = sphi %s847_s15, %s1055_s15  }
   0x6   : > { %s27_s23 = sadd.s32 1, %s809_s19  ;;  %s135_s24 = sadd.s32 1, %s801_s17 }
   0x7   : > { %p28_p0 = scmp.ge.s32.totalorder %s27_s23, 2  ;;  %p145_p1 = scmp.ne.s32.totalorder %s801_s17, %s797_s16 }
   0x8   : > { %p146_p2 = scmp.eq.s32.totalorder %s581_s21, 1  ;;  %p151_p3 = scmp.ne.s32.totalorder %s797_s16, %s793_s15 }
   0x9   : > { %s1061_s23 = smov (%p28_p0, %s27_s23), 0  ;;  %p152_p5 = scmp.eq.s32.totalorder %s582_s22, 1 }
   0xa   : > { %p887_p4 = por %p146_p2, %p145_p1  ;;  %s130_s26 = ssub.s32 %s809_s19, %s1061_s23 }
   0xb   : > { %p583_p6 = scmp.ge.s32.totalorder %s813_s20, 1  ;;  %p133_p7 = scmp.eq.s32.totalorder %s130_s26, 0 }
   0xc   : > { %s1046_s25 = scalar_select %p887_p4, 1, 0 }
   0xd   : > { %p894_p8 = por %p152_p5, %p151_p3  ;;  %p159_p9 = scmp.lt.s32.totalorder %s813_s20, 3 }
   0xe   : > { %s900_s28 = scalar_select %p133_p7, %s801_s17, %s135_s24  }
   0xf   : > { %s1047_s27 = scalar_select %p894_p8, 1, 0 }
  0x10   : > { %p902_p10 = pnand %p583_p6, %p159_p9  ;;  %p906_p11 = scmp.eq.s32.totalorder %s581_s21, 0 }
  0x11   : > { %s815_s5 = smov [#allocation2]   ;;  %s703_s10 = scalar_lea.hbm %s1040_s3, 1024 }
  0x12   : > { %s1048_s29 = scalar_select %p902_p10, 1, 0 }
  0x13   : > { %s1049_s30 = scalar_select %p906_p11, 1, 0 }
  0x14   : > { %p637_p12 = pneg %p902_p10  ;;  %s180_s6 = sshll.u32 %s815_s5, 4  ;;  %s181_s6 = int_to_ptr.vmem [resolvable:$true] %s180_s6 }
  0x15   : > { %p704_p0 = scmp.ne.s32.totalorder %s1040_s3, %s703_s10  ;;  %p710_p5 = scmp.lt.u32.totalorder %s703_s10, %s1040_s3 }
  0x16   : > { %p914_p13 = pnand %p906_p11, %p637_p12 }
  0x18   : > { %p705_p1 = pneg %p914_p13 }
  0x1a   : > { %p706_p2 = pnand %p705_p1, %p704_p0 }
  0x1c   : > { %p707_p3 = pneg %p706_p2 }
  0x1e   : > { %p712_p6 = pnand %p710_p5, %p707_p3 }
  0x20   : > { %715 = shalt.err (!%p712_p6)
}
  0x21   : > { %s716_s21 = scalar_lea.vmem %s181_s6, 1024  ;;  %p724_p8 = scmp.lt.s32.totalorder %s181_s6, %s181_s6 }
  0x22   : > { %p717_p7 = scmp.ne.s32.totalorder %s181_s6, %s716_s21  ;;  %p725_p4 = scmp.lt.s32.totalorder %s716_s21, %s716_s21 }
  0x24   : > { %p719_p9 = pnand %p717_p7, %p705_p1  ;;  %p726_p11 = por %p725_p4, %p724_p8 }
  0x26   : > { %p720_p12 = pneg %p719_p9 }
  0x28   : > { %p727_p10 = pnand %p726_p11, %p720_p12 }
  0x2a   : > { %730 = shalt.err (!%p727_p10)
}
  0x2b   : > { %s816_s22 = smov 128   ;;  %s817_s24 = smov 8  }
  0x2c   : > { %640 = dma.hbm_to_vmem [thread:$0]  (!%p914_p13), %s1040_s3, 1024, %s181_s6, [#allocation3], %s816_s22, %s816_s22, %s817_s24  }
  0x2d   : > { %p1051_p0 = scmp.ne.s32.totalorder %s1048_s29, 0 }
  0x2e   : > { %p1052_p2 = scmp.ne.s32.totalorder (!%p1051_p0), %s1049_s30, 0 }
  0x2f   : > { %206 = sbr.rel (%p1051_p0) target bundleno = 450 (0x1c2), region = 36 }
  0x36   : > { %784 = dma.done.wait (%p1052_p2), [#allocation3], 1024  }
  0x37   : > { %786 = vsyncadd (%p1052_p2), [#allocation3], 4294966272  ;;  %p234_p4 = scmp.lt.s32.totalorder %s805_s18, 1  ;;  %v244_v1 = vld [vmem:[%s1038_s1] sm:$0x7]  ;;  %vm309_vm0 = vcmask 1042432  }
  0x38   : > { %615 = vmatprep.subr.msk.mxu0 %vm309_vm0, %v244_v1  ;;  %629 = vmatprep.subr.msk.mxu1 %vm309_vm0, %v244_v1  ;;  %v419_v2 = vld [vmem:[#allocation2 + $0x8] sm:$0xff]  ;;  %s818_s30 = smov 64   ;;  %v420_v3 = vld [vmem:[#allocation2 + $0x10] sm:$0xff]  ;;  %v421_v4 = vld [vmem:[#allocation2 + $0x18] sm:$0xff]  ;;  %vm284_vm1 = vcmask 23552   ;;  %s231_s12 = sand.u32 1, %s797_s16  }
  0x39   : > { %s235_s8 = scalar_select %p234_p4, %s805_s18, 1  ;;  %616 = vmatpush3.msk.msra.mxu0 %vm309_vm0, %v244_v1  ;;  %630 = vmatpush3.msk.msra.mxu1 %vm309_vm0, %v244_v1  ;;  %v422_v5 = vld [vmem:[#allocation2 + $0x20] sm:$0xff]  ;;  %v423_v6 = vld [vmem:[#allocation2 + $0x28] sm:$0xff]  ;;  %v424_v7 = vld [vmem:[#allocation2 + $0x30] sm:$0xff]  ;;  %vm458_vm2 = vcmask 523264  }
  0x3a   : > { %436 = vrot.lane.b32.xlu1 %v419_v2, %s818_s30  ;;  %v425_v8 = vld [vmem:[#allocation2 + $0x38] sm:$0xff]  ;;  %v418_v9 = vld [vmem:[#allocation2] sm:$0xff]  ;;  %s588_s21 = sshll.u32 %s231_s12, 6  ;;  %s605_s26 = sshll.u32 %s805_s18, 10 }
  0x3b   : > { %s589_s9 = sshll.u32 %s235_s8, 2  ;;  %v590_v20 = vld [vmem:[%s1039_s2] ss:$0 sm:$0xff]  ;;  %s963_s22 = scalar_lea.vmem [#allocation5], %s588_s21 }
  0x3c   : > { %s240_s11 = scalar_lea.vmem %s1037_s0, %s589_s9  ;;  %s491_s24 = sshll.u32 %s963_s22, 4  ;;  %s978_s24 = int_to_ptr.vmem [resolvable:$true] %s491_s24 }
  0x3d   : > { %v243_v0 = vld [vmem:[%s240_s11] sm:$0x7]  ;;  %s983_s9 = scalar_lea.hbm %s1041_s4, %s605_s26  ;;  %s991_s18 = scalar_lea.sflag [#allocation4], %s231_s12 }
  0x3e   : > { %252 = vxpose.xlu0.b32.start.end [1/1] (short) (narrow) %v243_v0, 64  ;;  %438 = vrot.lane.b32.xlu1 %v420_v3, %s818_s30  ;;  %s731_s10 = scalar_lea.vmem %s978_s24, 1024  ;;  %p1053_p10 = scmp.ne.s32.totalorder %s1046_s25, 0 }
  0x3f   : > { %p732_p8 = scmp.ne.s32.totalorder %s978_s24, %s731_s10  ;;  %s819_s7 = smov [#allocation5]  }
  0x40   : > { %s735_s11 = sshll.u32 %s819_s7, 4  ;;  %s736_s11 = int_to_ptr.vmem [resolvable:$false] %s735_s11 }
  0x41   : > { %p733_p11 = pnand %p732_p8, %p1053_p10  ;;  %s737_s6 = scalar_lea.vmem %s736_s11, 2048 }
  0x42   : > { %440 = vrot.lane.b32.xlu1 %v421_v4, %s818_s30  ;;  %p738_p1 = scmp.lt.s32.totalorder %s978_s24, %s736_s11  ;;  %p739_p3 = scmp.lt.s32.totalorder %s737_s6, %s731_s10 }
  0x43   : > { %p734_p13 = pneg %p733_p11 }
  0x44   : > { %p740_p5 = por %p739_p3, %p738_p1 }
  0x46   : > { %442 = vrot.lane.b32.xlu1 %v422_v5, %s818_s30  ;;  %p741_p6 = pnand %p740_p5, %p734_p13 }
  0x4a   : > { %444 = vrot.lane.b32.xlu1 %v423_v6, %s818_s30 }
  0x4e   : > { %446 = vrot.lane.b32.xlu1 %v424_v7, %s818_s30 }
  0x52   : > { %448 = vrot.lane.b32.xlu1 %v425_v8, %s818_s30 }
  0x83   : > { %434 = vrot.lane.b32.xlu0 %v418_v9, %s818_s30 }
  0xac   : > { %v437_v18 = vpop.permute.xlu1 %436 }
  0xb0   : > { %v439_v19 = vpop.permute.xlu1 %438 }
  0xb4   : > { %v441_v22 = vpop.permute.xlu1 %440 }
  0xb8   : > { %v443_v29 = vpop.permute.xlu1 %442 }
  0xbc   : > { %v445_v36 = vpop.permute.xlu1 %444 }
  0xbe   : > { %v268_v10 = vpop.trf.xlu0 }
  0xbf   : > { %617 = vmatprep.mubr.msk.f32.mxu0 %vm284_vm1, %v268_v10 }
  0xc0   : > { %v447_v41 = vpop.permute.xlu1 %446 }
  0xc2   : > { %v269_v11 = vpop.trf.xlu0 }
  0xc3   : > { %618 = vmatmul.mubr.msk.f32.vlgmr.msra.gmra.mrb[0].mxu0 %vm284_vm1, %v269_v11 }
  0xc4   : > { %v449_v45 = vpop.permute.xlu1 %448 }
  0xc6   : > { %v270_v12 = vpop.trf.xlu0 }
  0xc7   : > { %620 = vmatprep.mubr.msk.f32.mxu0 %vm284_vm1, %v270_v12 }
  0xca   : > { %v271_v13 = vpop.trf.xlu0 }
  0xcb   : > { %621 = vmatmul.mubr.msk.f32.gmra.mrb[2].mxu0 %vm284_vm1, %v271_v13 }
  0xce   : > { %v272_v14 = vpop.trf.xlu0 }
  0xcf   : > { %623 = vmatprep.mubr.msk.f32.mxu1 %vm284_vm1, %v272_v14 }
  0xd2   : > { %v273_v15 = vpop.trf.xlu0 }
  0xd3   : > { %624 = vmatmul.mubr.msk.f32.vlgmr.msra.gmra.mrb[0].mxu1 %vm284_vm1, %v273_v15 }
  0xd6   : > { %v274_v16 = vpop.trf.xlu0 }
  0xd7   : > { %626 = vmatprep.mubr.msk.f32.mxu1 %vm284_vm1, %v274_v16 }
  0xda   : > { %v275_v17 = vpop.trf.xlu0 }
  0xdb   : > { %627 = vmatmul.mubr.msk.f32.gmra.mrb[2].mxu1 %vm284_vm1, %v275_v17 }
  0xf5   : > { %v435_v25 = vpop.permute.xlu0 %434 }
 0x196   : > { %v619_v21 = vpop.f32.mrb[0].mxu0 }
 0x197   : > { %v385_v23 = vadd.f32 %v619_v21, %v590_v20  ;;  %v379_v24 = vpop.f32.mrb[1].mxu0 }
 0x198   : > { %v380_v26 = vadd.f32 %v590_v20, %v379_v24 }
 0x199   : > { %v460_v27 = vsel %vm458_vm2, %v385_v23, %v437_v18 }
 0x19a   : > { %468 = vst [vmem:[%s963_s22 + $0x8] sm:$0xff] %v460_v27  ;;  %v459_v28 = vsel %vm458_vm2, %v380_v26, %v435_v25 }
 0x19b   : > { %467 = vst [vmem:[%s963_s22] sm:$0xff] %v459_v28 }
 0x19e   : > { %v622_v30 = vpop.f32.mrb[2].mxu0 }
 0x19f   : > { %v395_v31 = vadd.f32 %v622_v30, %v590_v20  ;;  %v389_v32 = vpop.f32.mrb[3].mxu0 }
 0x1a0   : > { %v390_v33 = vadd.f32 %v590_v20, %v389_v32 }
 0x1a1   : > { %v462_v34 = vsel %vm458_vm2, %v395_v31, %v441_v22 }
 0x1a2   : > { %v461_v35 = vsel %vm458_vm2, %v390_v33, %v439_v19  ;;  %470 = vst [vmem:[%s963_s22 + $0x18] sm:$0xff] %v462_v34 }
 0x1a3   : > { %469 = vst [vmem:[%s963_s22 + $0x10] sm:$0xff] %v461_v35 }
 0x1a6   : > { %v625_v37 = vpop.f32.mrb[0].mxu1 }
 0x1a7   : > { %v405_v38 = vadd.f32 %v625_v37, %v590_v20  ;;  %v399_v39 = vpop.f32.mrb[1].mxu1 }
 0x1a8   : > { %v400_v40 = vadd.f32 %v590_v20, %v399_v39 }
 0x1a9   : > { %v464_v42 = vsel %vm458_vm2, %v405_v38, %v445_v36 }
 0x1aa   : > { %v463_v43 = vsel %vm458_vm2, %v400_v40, %v443_v29  ;;  %472 = vst [vmem:[%s963_s22 + $0x28] sm:$0xff] %v464_v42 }
 0x1ab   : > { %471 = vst [vmem:[%s963_s22 + $0x20] sm:$0xff] %v463_v43 }
 0x1ae   : > { %v628_v44 = vpop.f32.mrb[2].mxu1 }
 0x1af   : > { %v415_v46 = vadd.f32 %v628_v44, %v590_v20  ;;  %v409_v47 = vpop.f32.mrb[3].mxu1 }
 0x1b0   : > { %v410_v48 = vadd.f32 %v590_v20, %v409_v47 }
 0x1b1   : > { %v466_v49 = vsel %vm458_vm2, %v415_v46, %v449_v45 }
 0x1b2   : > { %v465_v50 = vsel %vm458_vm2, %v410_v48, %v447_v41  ;;  %474 = vst [vmem:[%s963_s22 + $0x38] sm:$0xff] %v466_v49 }
 0x1b3   : > { %473 = vst [vmem:[%s963_s22 + $0x30] sm:$0xff] %v465_v50 }
 0x1b4   : > { %744 = shalt.err (!%p741_p6)
}
 0x1b5   : > { %s745_s29 = scalar_lea.hbm %s983_s9, 1024  ;;  %s749_s13 = scalar_lea.hbm %s1041_s4, 2048 }
 0x1b6   : > { %p746_p7 = scmp.ne.s32.totalorder %s983_s9, %s745_s29  ;;  %p750_p0 = scmp.lt.u32.totalorder %s983_s9, %s1041_s4 }
 0x1b7   : > { %p751_p2 = scmp.lt.u32.totalorder %s749_s13, %s745_s29  ;;  %p753_p8 = scmp.lt.u32.totalorder %s745_s29, %s983_s9 }
 0x1b8   : > { %p747_p9 = pnand %p746_p7, %p1053_p10 }
 0x1b9   : > { %p752_p4 = por %p751_p2, %p750_p0 }
 0x1ba   : > { %p748_p12 = pneg %p747_p9 }
 0x1bb   : > { %p754_p11 = por %p753_p8, %p752_p4 }
 0x1bd   : > { %p755_p13 = pnand %p754_p11, %p748_p12 }
 0x1bf   : > { %758 = shalt.err (!%p755_p13)
}
 0x1c0   : > { %s820_s22 = smov 128   ;;  %s821_s26 = smov 8  }
 0x1c1   : > { %635 = dma.vmem_to_hbm [thread:$0]  (%p1053_p10), %s978_s24, 1024, %s983_s9, %s991_s18, %s820_s22, %s820_s22, %s821_s26  }
 0x1c2 PF: > { %p647_p1 = scmp.ge.s32.totalorder %s813_s20, 2  ;;  %s506_s5 = sand.u32 1, %s793_s15  }
 0x1c3   : > { %p1054_p3 = scmp.ne.s32.totalorder %s1047_s27, 0  ;;  %s507_s8 = scalar_lea.sflag [#allocation4], %s506_s5 }
 0x1c5   : > { %p642_p5 = pnand %p647_p1, %p1054_p3 }
 0x1c7   : > { %788 = dma.done.wait (!%p642_p5), %s507_s8, 1024  }
 0x1c8   : > { %790 = vsyncadd (!%p642_p5), %s507_s8, 4294966272  ;;  %s18_s20 = sadd.s32 1, %s813_s20   ;;  %s1055_s15 = smov %s797_s16 }
 0x1c9   : > { %p15_p6 = scmp.ge.s32.totalorder %s18_s20, 4   ;;  %s1056_s16 = smov %s801_s17 }
 0x1ca   : > { %s1057_s17 = smov %s900_s28  ;;  %s1058_s18 = smov %s809_s19 }
 0x1cb   : > { %s1059_s19 = smov %s1061_s23  ;;  %17 = sbr.rel (!%p15_p6) target bundleno = 5 (0x5), region = 77 }
 0x1d2   :  { %512 = vsyncpa [#allocation3], 1 }
 0x1d3   :  { %514 = vsyncpa [#allocation3 + $0x1], 1 }
 0x1d4   :  { %515 = vsyncpa [#allocation4], 1 }
 0x1d5   :  { %517 = vsyncpa [#allocation4 + $0x1], 1 }

</bundles_post_ra>
